<compile_context>
chip_gen: v6e
topology: v6e:2x2x1
jax: 0.10.0
libtpu: 0.0.40
codegen_flags: <defaults>
</compile_context>

<pallas_src>
import functools

import jax
import jax.numpy as jnp
from jax import lax
from jax.experimental import pallas as pl
from jax.experimental.pallas import tpu as pltpu


def _round_up(x, m):
    return (x + m - 1) // m * m


def _tile_and_pad(dim, preferred, align):
    """Return (tile, padded_dim).

    Prefers an `align`-multiple divisor of `dim` near `preferred`; otherwise
    pads `dim` up to a multiple of `preferred`.  Never falls back to the full
    dimension (which could blow the VMEM budget on awkward shapes)."""
    preferred = max(align, (preferred // align) * align)
    if dim <= preferred:
        t = _round_up(dim, align)
        return t, t
    t = preferred
    while t >= align and dim % t != 0:
        t -= align
    if t >= max(align, preferred // 2):
        return t, dim                      # good aligned divisor, no padding
    return preferred, _round_up(dim, preferred)


# ----------------------------------------------------------------------------
# Kernel 1: steer the last token of every sequence.
#   x_ref  : [tm, H]  hidden-state tile (prelogits)
#   dir_ref: [1, H]   combined steering direction (f32)
#   xs_ref : [tm, H]  steered prelogits, written in the lm_head weight dtype
#                     so it can feed the MXU directly.
# The "last token" row mask is built in-kernel from the static seq length
# (no HBM mask stream).
# ----------------------------------------------------------------------------
def _steer_kernel(x_ref, dir_ref, xs_ref, *, seq_len, tm):
    rows = pl.program_id(0) * tm + lax.broadcasted_iota(jnp.int32, (tm, 1), 0)
    is_last = (rows % seq_len == seq_len - 1).astype(jnp.float32)
    x = x_ref[...].astype(jnp.float32)
    xs = x * (1.0 + is_last * dir_ref[...])        # rows with mask==0 -> *1.0
    xs_ref[...] = xs.astype(xs_ref.dtype)


# ----------------------------------------------------------------------------
# Kernel 2: pure lm_head projection.  Grid = (V//tv outer, M//tm inner); both
# axes "parallel".  The weight stays in its native [V, H] layout and the
# contraction is on H (transposed-RHS matmul on the MXU, f32 accumulation).
#   xs_ref    : [tm, H]   steered prelogits tile (weight dtype)
#   w_ref     : [tv, H]   lm_head weight tile
#   logits_ref: [tm, tv]  output logits tile (lane-dense)
# ----------------------------------------------------------------------------
def _lmhead_kernel(xs_ref, w_ref, logits_ref):
    logits_ref[...] = lax.dot_general(
        xs_ref[...], w_ref[...],
        dimension_numbers=(((1,), (1,)), ((), ())),
        preferred_element_type=jnp.float32,
    ).astype(logits_ref.dtype)


def steer_and_lm_head(prelogits, combined_direction, lm_head_weight,
                      *, tm=512, tv=1024):
    """prelogits: [B,S,H]; combined_direction: [1,H]; lm_head_weight: [V,H].

    Returns (logits [B,S,V], steered_prelogits [B,S,H])."""
    B, S, H = prelogits.shape
    V, Hw = lm_head_weight.shape
    assert Hw == H
    M = B * S

    out_dtype = prelogits.dtype
    w_dtype = lm_head_weight.dtype
    w_b = jnp.dtype(w_dtype).itemsize
    o_b = jnp.dtype(out_dtype).itemsize

    tm, M_pad = _tile_and_pad(M, tm, 8)
    tv, V_pad = _tile_and_pad(V, tv, 128)

    x = prelogits.reshape(M, H)
    if M_pad > M:
        x = jnp.pad(x, ((0, M_pad - M), (0, 0)))
    w = lm_head_weight
    if V_pad > V:
        w = jnp.pad(w, ((0, V_pad - V), (0, 0)))
    dir_ = combined_direction.reshape(1, H).astype(jnp.float32)

    # ---- steering (elementwise, tiny). Output in the weight dtype: explicit,
    # documented choice — an f32 prelogits LHS is truncated to the weight
    # dtype before hitting the MXU.
    xs_pad = pl.pallas_call(
        functools.partial(_steer_kernel, seq_len=S, tm=tm),
        out_shape=jax.ShapeDtypeStruct((M_pad, H), w_dtype),
        grid=(M_pad // tm,),
        in_specs=[
            pl.BlockSpec((tm, H), lambda i: (i, 0)),
            pl.BlockSpec((1, H), lambda i: (0, 0)),
        ],
        out_specs=pl.BlockSpec((tm, H), lambda i: (i, 0)),
        compiler_params=pltpu.CompilerParams(
            dimension_semantics=("parallel",)),
    )(x, dir_)

    # ---- lm_head projection, V-outer / M-inner, both axes parallel.
    cost = pl.CostEstimate(
        flops=2 * M_pad * H * V_pad,
        transcendentals=0,
        bytes_accessed=(V_pad * H * w_b                    # weight: one pass
                        + (V_pad // tv) * M_pad * H * w_b  # xs re-reads
                        + M_pad * V_pad * o_b),            # logits write
    )
    vmem_est = (2 * tm * H * w_b        # xs tile, double-buffered
                + 2 * tv * H * w_b      # weight tile, double-buffered
                + 2 * tm * tv * o_b)    # logits tile, double-buffered
    # ~8 MiB compiler headroom; cap at 56 MiB so it always fits v7x's 64 MiB.
    vmem_limit = int(min(max(vmem_est + (8 << 20), 32 << 20), 56 << 20))

    logits_pad = pl.pallas_call(
        _lmhead_kernel,
        out_shape=jax.ShapeDtypeStruct((M_pad, V_pad), out_dtype),
        grid=(V_pad // tv, M_pad // tm),
        in_specs=[
            pl.BlockSpec((tm, H), lambda j, i: (i, 0)),
            pl.BlockSpec((tv, H), lambda j, i: (j, 0)),   # native [V,H] layout
        ],
        out_specs=pl.BlockSpec((tm, tv), lambda j, i: (i, j)),
        compiler_params=pltpu.CompilerParams(
            dimension_semantics=("parallel", "parallel"),
            vmem_limit_bytes=vmem_limit,
        ),
        cost_estimate=cost,
    )(xs_pad, w)

    if M_pad > M or V_pad > V:
        logits_pad = logits_pad[:M, :V]
    if M_pad > M:
        xs_pad = xs_pad[:M]

    logits = logits_pad.reshape(B, S, V)
    steered = xs_pad.astype(out_dtype).reshape(B, S, H)
    return logits, steered


# ----------------------------------------------------------------------------
# Plain-JAX glue reproducing the module's steering-vector bookkeeping
# (tiny O(H) vector math — not a kernel hot path).
# ----------------------------------------------------------------------------
def add_vector_shift(components, start_embed, end_embed, weight=1.0):
    diff = end_embed - start_embed
    direction = diff / jnp.linalg.norm(diff)
    components.append((direction, weight))
    return components


def calculate_combined_direction(components, emb_dim):
    combined = jnp.zeros((1, emb_dim), dtype=jnp.float32)
    for direction, weight in components:
        combined = combined + direction * weight
    norm = jnp.linalg.norm(combined)
    safe_norm = jnp.where(norm > 0, norm, 1.0)
    return jnp.where(norm > 0, combined / safe_norm, combined)


if __name__ == "__main__":
    key = jax.random.PRNGKey(0)
    B, S, H, V = 2, 8, 128, 1024   # small synthetic (batch, seq, hidden, vocab)
    k1, k2, k3, k4, k5 = jax.random.split(key, 5)

    # TODO(synk): the full Llama-3.2-1B backbone (`self.formless`), tokenizer,
    # embed_tokens lookup, and KV-cache plumbing have no clean Pallas
    # translation here; synthetic hidden states stand in for
    # outputs.hidden_states[-1].
    prelogits = jax.random.normal(k1, (B, S, H), dtype=jnp.float32).astype(jnp.bfloat16)

    # Deterministic lm_head weight, PyTorch layout [vocab, hidden], bf16.
    lm_head_w = (jax.random.normal(k2, (V, H), dtype=jnp.float32)
                 / jnp.sqrt(H)).astype(jnp.bfloat16)

    # Synthetic "token embedding" pairs feeding add_vector_shift ([1, H]).
    start1 = jax.random.normal(k3, (1, H), dtype=jnp.float32)
    end1 = jax.random.normal(k4, (1, H), dtype=jnp.float32)
    start2 = jax.random.normal(k5, (1, H), dtype=jnp.float32)
    end2 = -start2

    comps = []
    comps = add_vector_shift(comps, start1, end1, weight=1.0)
    comps = add_vector_shift(comps, start2, end2, weight=0.5)
    combined = calculate_combined_direction(comps, H)   # [1, H], unit norm, f32

    logits, steered_prelogits = steer_and_lm_head(prelogits, combined, lm_head_w)
    jax.block_until_ready((logits, steered_prelogits))

    assert logits.shape == (B, S, V)
    assert steered_prelogits.shape == (B, S, H)

    # Lightweight numerical check against a plain-JAX reference.
    # NOTE: assumes every sequence has exactly S valid tokens (mirrors
    # prelogits[:, -1, :]); right-padded batches would steer the pad row.
    x32 = prelogits.astype(jnp.float32)
    mask3 = (jnp.arange(S) == S - 1).astype(jnp.float32).reshape(1, S, 1)
    xs_exp = (x32 * (1.0 + mask3 * combined.reshape(1, 1, H))).astype(prelogits.dtype)
    logits_exp = jnp.einsum(
        "bsh,vh->bsv", xs_exp, lm_head_w,
        preferred_element_type=jnp.float32).astype(prelogits.dtype)
    assert jnp.allclose(steered_prelogits.astype(jnp.float32),
                        xs_exp.astype(jnp.float32), atol=5e-2, rtol=5e-2)
    assert jnp.allclose(logits.astype(jnp.float32),
                        logits_exp.astype(jnp.float32), atol=5e-2, rtol=5e-2)

    print("KERNEL_OK")
</pallas_src>

<mosaic_0001>
module attributes {stable_mosaic.version = 11 : i64} {
  func.func @_steer_kernel(%arg0: i32, %arg1: memref<16x128xbf16, #tpu.memory_space<vmem>>, %arg2: memref<1x128xf32, #tpu.memory_space<vmem>>, %arg3: memref<16x128xbf16, #tpu.memory_space<vmem>>) attributes {dimension_semantics = [#tpu.dimension_semantics<parallel>], iteration_bounds = array<i64: 1>, scalar_prefetch = 0 : i64, scratch_operands = 0 : i64, tpu.core_type = #tpu.core_type<tc>, window_params = [{transform_indices = @transform_0, window_bounds = array<i64: 16, 128>}, {pipeline_mode = #tpu.pipeline_mode<synchronous>, transform_indices = @transform_1, window_bounds = array<i64: 1, 128>}, {transform_indices = @transform_2, window_bounds = array<i64: 16, 128>}]} {
    %c16_i32 = arith.constant 16 : i32
    %0 = arith.muli %arg0, %c16_i32 : i32
    %1 = tpu.iota {dimensions = array<i32: 0>} : vector<16x1xi32>
    %2 = vector.broadcast %0 : i32 to vector<16x1xi32>
    %3 = arith.addi %2, %1 : vector<16x1xi32>
    %c8_i32 = arith.constant 8 : i32
    %c0_i32 = arith.constant 0 : i32
    %4 = arith.cmpi eq, %c8_i32, %c0_i32 : i32
    %c1_i32 = arith.constant 1 : i32
    %5 = arith.select %4, %c1_i32, %c8_i32 : i32
    %6 = vector.broadcast %5 : i32 to vector<16x1xi32>
    %7 = arith.remsi %3, %6 : vector<16x1xi32>
    %c0_i32_0 = arith.constant 0 : i32
    %8 = vector.broadcast %c0_i32_0 : i32 to vector<16x1xi32>
    %9 = arith.cmpi ne, %7, %8 : vector<16x1xi32>
    %c0_i32_1 = arith.constant 0 : i32
    %10 = vector.broadcast %c0_i32_1 : i32 to vector<16x1xi32>
    %11 = arith.cmpi slt, %7, %10 : vector<16x1xi32>
    %c0_i32_2 = arith.constant 0 : i32
    %12 = arith.cmpi slt, %5, %c0_i32_2 : i32
    %13 = vector.broadcast %12 : i1 to vector<16x1xi1>
    %14 = vector.broadcast %13 : vector<16x1xi1> to vector<16x1xi1>
    %15 = arith.xori %11, %14 : vector<16x1xi1>
    %16 = arith.andi %15, %9 : vector<16x1xi1>
    %17 = vector.broadcast %5 : i32 to vector<16x1xi32>
    %18 = arith.addi %7, %17 : vector<16x1xi32>
    %19 = arith.select %16, %18, %7 : vector<16x1xi1>, vector<16x1xi32>
    %c7_i32 = arith.constant 7 : i32
    %20 = vector.broadcast %c7_i32 : i32 to vector<16x1xi32>
    %21 = arith.cmpi eq, %19, %20 : vector<16x1xi32>
    %22 = arith.extui %21 : vector<16x1xi1> to vector<16x1xi32>
    %23 = arith.sitofp %22 : vector<16x1xi32> to vector<16x1xf32>
    %c0 = arith.constant 0 : index
    %c0_3 = arith.constant 0 : index
    %24 = vector.load %arg1[%c0, %c0_3] : memref<16x128xbf16, #tpu.memory_space<vmem>>, vector<16x128xbf16>
    %25 = arith.extf %24 : vector<16x128xbf16> to vector<16x128xf32>
    %c0_4 = arith.constant 0 : index
    %c0_5 = arith.constant 0 : index
    %26 = vector.load %arg2[%c0_4, %c0_5] : memref<1x128xf32, #tpu.memory_space<vmem>>, vector<1x128xf32>
    %27 = vector.broadcast %23 : vector<16x1xf32> to vector<16x128xf32>
    %28 = vector.broadcast %26 : vector<1x128xf32> to vector<16x128xf32>
    %29 = arith.mulf %27, %28 : vector<16x128xf32>
    %cst = arith.constant 1.000000e+00 : f32
    %30 = vector.broadcast %cst : f32 to vector<16x128xf32>
    %31 = arith.addf %30, %29 : vector<16x128xf32>
    %32 = arith.mulf %25, %31 : vector<16x128xf32>
    %33 = arith.truncf %32 : vector<16x128xf32> to vector<16x128xbf16>
    %c0_6 = arith.constant 0 : index
    %c0_7 = arith.constant 0 : index
    %34 = vector.load %arg3[%c0_6, %c0_7] : memref<16x128xbf16, #tpu.memory_space<vmem>>, vector<16x128xbf16>
    tpu.vector_store %arg3[%c0_6, %c0_7], %33 {strides = array<i32>} : memref<16x128xbf16, #tpu.memory_space<vmem>>, vector<16x128xbf16>,
    return
  }
  func.func @transform_0(%arg0: i32) -> (i32, i32) {
    %c0_i32 = arith.constant 0 : i32
    %c0_i32_0 = arith.constant 0 : i32
    return %arg0, %c0_i32 : i32, i32
  }
  func.func @transform_1(%arg0: i32) -> (i32, i32) {
    %c0_i32 = arith.constant 0 : i32
    %c0_i32_0 = arith.constant 0 : i32
    %c0_i32_1 = arith.constant 0 : i32
    return %c0_i32, %c0_i32_0 : i32, i32
  }
  func.func @transform_2(%arg0: i32) -> (i32, i32) {
    %c0_i32 = arith.constant 0 : i32
    %c0_i32_0 = arith.constant 0 : i32
    return %arg0, %c0_i32 : i32, i32
  }
}

</mosaic_0001>

<bundles_post_ra>
// kernel: tpu_custom_call.1
= control target key start
LH: loop header
LB: loop body
LE: loop exit
PB: predicated region body
PF: predicated region fallthrough
CT: control target
= control target key end

     0   :  { %7 = vsyncpa [#allocation3], 0  ;;  %s207_s0 = inlined_call_operand.hbm [shape: bf16[16,128], index: 0, kind: input, shape index: {}]   ;;  %s208_s1 = inlined_call_operand.vmem [shape: f32[1,128], index: 1, kind: input, shape index: {}]   ;;  %s209_s2 = inlined_call_operand.hbm [shape: bf16[16,128], index: 2, kind: output, shape index: {}]  }
   0x1   :  { %8 = vsyncpa [#allocation4], 0  ;;  %s172_s9 = smov [#allocation2]  }
   0x2   :  { %s14_s10 = sshll.u32 %s172_s9, 4  ;;  %s15_s10 = int_to_ptr.vmem [resolvable:$true] %s14_s10 }
   0x3   :  { %s136_s11 = scalar_lea.vmem %s15_s10, 128  ;;  %p141_p1 = scmp.lt.s32.totalorder %s15_s10, %s15_s10 }
   0x4   :  { %p137_p0 = scmp.ne.s32.totalorder %s15_s10, %s136_s11  ;;  %p142_p2 = scmp.lt.s32.totalorder %s136_s11, %s136_s11 }
   0x6   :  { %p143_p3 = por %p142_p2, %p141_p1 }
   0x8   :  { %p144_p4 = pnand %p143_p3, %p137_p0 }
   0xa   :  { %147 = shalt.err (!%p144_p4)
}
   0xb   :  { %s173_s12 = smov 64   ;;  %s174_s13 = smov 4  }
   0xc   :  { %20 = dma.hbm_to_vmem [thread:$0]  %s207_s0, 128, %s15_s10, [#allocation3], %s173_s12, %s173_s12, %s174_s13  }
   0xd   :  { %168 = dma.done.wait [#allocation3], 128  }
   0xe   :  { %169 = vsyncadd [#allocation3], 4294967168  ;;  %v27_v0 = vlaneseq  ;;  %v175_v5 = vmov 0.0   ;;  %v115_v7 = vld [vmem:[#allocation2] sm:$0xff]   ;;  %s176_s0 = smov [#allocation5]  }
   0xf   :  { %v109_v8 = vld [vmem:[%s208_s1] ss:$0 sm:$0xff]  ;;  %v116_v9 = vunpack.c.l.bf16 %v115_v7  ;;  %v117_v12 = vunpack.c.h.bf16 %v115_v7  ;;  %s95_s18 = sshll.u32 %s176_s0, 4  ;;  %s96_s18 = int_to_ptr.vmem [resolvable:$true] %s95_s18 }
  0x10   :  { %v28_v1 = vshrl.u32 %v27_v0, 7  ;;  %s148_s19 = scalar_lea.vmem %s96_s18, 128  ;;  %p153_p6 = scmp.lt.s32.totalorder %s96_s18, %s96_s18 }
  0x11   :  { %p149_p5 = scmp.ne.s32.totalorder %s96_s18, %s148_s19  ;;  %p154_p7 = scmp.lt.s32.totalorder %s148_s19, %s148_s19 }
  0x12   :  { %v29_v2 = vadd.s32 8, %v28_v1  ;;  %v37_v3 = vand.u32 7, %v28_v1 }
  0x13   :  { %p155_p8 = por %p154_p7, %p153_p6 }
  0x14   :  { %v44_v4 = vand.u32 7, %v29_v2  ;;  %vm57_vm0 = vcmp.eq.s32.totalorder %v37_v3, 7 }
  0x15   :  { %v107_v6 = vsel %vm57_vm0, 1.0, %v175_v5  ;;  %p156_p9 = pnand %p155_p8, %p149_p5 }
  0x16   :  { %vm58_vm1 = vcmp.eq.s32.totalorder %v44_v4, 7  ;;  %v74_v10 = vmul.f32 %v109_v8, %v107_v6 }
  0x17   :  { %v108_v11 = vsel %vm58_vm1, 1.0, %v175_v5 }
  0x18   :  { %v75_v13 = vmul.f32 %v109_v8, %v108_v11  ;;  %v76_v14 = vadd.f32 1.0, %v74_v10 }
  0x1a   :  { %v77_v15 = vadd.f32 1.0, %v75_v13  ;;  %v78_v16 = vmul.f32 %v116_v9, %v76_v14 }
  0x1c   :  { %v79_v17 = vmul.f32 %v117_v12, %v77_v15 }
  0x1e   :  { %v121_v18 = vpack.c.bf16 %v79_v17, %v78_v16 }
  0x20   :  { %122 = vst [vmem:[#allocation5] sm:$0xff] %v121_v18  }
  0x21   :  { %159 = shalt.err (!%p156_p9)
}
  0x22   :  { %101 = dma.vmem_to_hbm [thread:$0]  %s96_s18, 128, %s209_s2, [#allocation4], %s173_s12, %s173_s12, %s174_s13  }
  0x23   :  { %170 = dma.done.wait [#allocation4], 128  }
  0x24   :  { %171 = vsyncadd [#allocation4], 4294967168 }
  0x25   :  { %105 = vsyncpa [#allocation3], 1 }
  0x26   :  { %106 = vsyncpa [#allocation4], 1 }

</bundles_post_ra>
